<compile_context>
chip_gen: v6e
topology: v6e:2x2x1
jax: 0.10.0
libtpu: 0.0.40
codegen_flags: <defaults>
</compile_context>

<pallas_src>
import functools

import jax
import jax.numpy as jnp
from jax.experimental import pallas as pl
from jax.experimental.pallas import tpu as pltpu

NUM_STATES = 4     # CartPole-v1 observation dim
NUM_ACTIONS = 2    # CartPole-v1 action dim
HIDDEN = 128
DROPOUT_P = 0.6
KEEP_THRESH = int(round((1.0 - DROPOUT_P) * (2 ** 32)))   # uint32 keep threshold


def _round_up(x, m):
    return ((x + m - 1) // m) * m


def _hash_u32(x):
    # splitmix32-style finalizer; uint32 wrapping arithmetic on the VPU.
    x = x ^ (x >> 16)
    x = x * jnp.uint32(0x7FEB352D)
    x = x ^ (x >> 15)
    x = x * jnp.uint32(0x846CA68B)
    x = x ^ (x >> 16)
    return x


def policy_kernel(seed_ref, xt_ref, w1_ref, w2_ref, o_ref, *, training):
    xt = xt_ref[...]      # (S, TB)  bf16
    w1 = w1_ref[...]      # (H, S)   bf16  (PyTorch (out,in) layout, no transpose needed)
    w2 = w2_ref[...]      # (A, H)   bf16

    # l1: (H, S) @ (S, TB) -> (H, TB)  f32 accumulate on the MXU.
    h = jnp.dot(w1, xt, preferred_element_type=jnp.float32)

    if training:
        # Dropout(p=0.6), training semantics: keep w.p. 0.4, scale kept by 1/0.4.
        # Counter-based hash PRNG: unique bits per (seed, tile, row, col).
        pid = pl.program_id(0).astype(jnp.uint32)
        seed = seed_ref[0].astype(jnp.uint32)
        rows = jax.lax.broadcasted_iota(jnp.int32, h.shape, 0).astype(jnp.uint32)
        cols = jax.lax.broadcasted_iota(jnp.int32, h.shape, 1).astype(jnp.uint32)
        base = _hash_u32(seed + pid * jnp.uint32(0x9E3779B9))
        bits = _hash_u32((rows * jnp.uint32(0x85EBCA6B))
                         ^ (cols * jnp.uint32(0xC2B2AE35)) ^ base)
        bits = _hash_u32(bits + rows + cols)
        keep = bits < jnp.uint32(KEEP_THRESH)
        h = jnp.where(keep, h * jnp.float32(1.0 / (1.0 - DROPOUT_P)),
                      jnp.float32(0.0))

    # Tanh in f32 (EUP).
    h = jnp.tanh(h)

    # l2: (A, H) @ (H, TB) -> (A, TB), full K=128 contraction on the MXU.
    logits = jnp.dot(w2, h.astype(jnp.bfloat16),
                     preferred_element_type=jnp.float32)

    # 2-class softmax, stable closed form: p0 = sigmoid(l0 - l1), p1 = 1 - p0.
    d = logits[0:1, :] - logits[1:2, :]          # (1, TB)
    p0 = 1.0 / (1.0 + jnp.exp(-d))
    p1 = 1.0 - p0
    o_ref[0:1, :] = p0.astype(o_ref.dtype)
    o_ref[1:2, :] = p1.astype(o_ref.dtype)


def policy_forward(x, w1, w2, seed=0, training=True, tb=None):
    """x: (B, 4) f32; w1: (128, 4); w2: (2, 128). Returns (B, 2) f32 probs."""
    x = jnp.asarray(x, jnp.float32)
    B, S = x.shape
    H, S2 = w1.shape
    A, H2 = w2.shape
    assert S == S2 == NUM_STATES and H == H2 == HIDDEN and A == NUM_ACTIONS

    # Batch tile: lane-aligned (multiple of 128), capped so the (128, TB) f32
    # hidden + mask intermediates stay well inside v7x's 64 MiB VMEM.
    if tb is None:
        tb = min(2048, _round_up(max(B, 1), 128))
    Bp = _round_up(B, tb)
    nt = Bp // tb

    # Glue (transpose / pad / dtype cast) stays in plain JAX.
    xt = jnp.zeros((S, Bp), jnp.bfloat16).at[:, :B].set(x.T.astype(jnp.bfloat16))
    w1b = jnp.asarray(w1, jnp.bfloat16)
    w2b = jnp.asarray(w2, jnp.bfloat16)
    seed_arr = jnp.array([seed], dtype=jnp.int32)

    out_t = pl.pallas_call(
        functools.partial(policy_kernel, training=training),
        out_shape=jax.ShapeDtypeStruct((A, Bp), jnp.float32),
        grid=(nt,),
        in_specs=[
            pl.BlockSpec(memory_space=pltpu.MemorySpace.SMEM),   # seed scalar
            pl.BlockSpec((S, tb), lambda i: (0, i)),             # xT batch tile
            pl.BlockSpec((H, S), lambda i: (0, 0)),              # w1 resident
            pl.BlockSpec((A, H), lambda i: (0, 0)),              # w2 resident
        ],
        out_specs=pl.BlockSpec((A, tb), lambda i: (0, i)),
        compiler_params=pltpu.CompilerParams(
            dimension_semantics=("parallel",),
            vmem_limit_bytes=32 * 1024 * 1024,
        ),
    )(seed_arr, xt, w1b, w2b)

    return out_t[:, :B].T    # (B, A)


def policy_reference(x, w1, w2):
    """Pure-JAX eval-mode reference (dropout off), matching kernel dtypes."""
    xb = jnp.asarray(x, jnp.bfloat16)
    w1b = jnp.asarray(w1, jnp.bfloat16)
    w2b = jnp.asarray(w2, jnp.bfloat16)
    h = jnp.tanh(jnp.dot(xb, w1b.T, preferred_element_type=jnp.float32))
    logits = jnp.dot(h.astype(jnp.bfloat16), w2b.T,
                     preferred_element_type=jnp.float32)
    return jax.nn.softmax(logits, axis=-1)


def init_params(key):
    """nn.Linear default init: U(-1/sqrt(fan_in), 1/sqrt(fan_in))."""
    k1, k2 = jax.random.split(key)
    b1 = 1.0 / jnp.sqrt(jnp.float32(NUM_STATES))
    b2 = 1.0 / jnp.sqrt(jnp.float32(HIDDEN))
    w1 = jax.random.uniform(k1, (HIDDEN, NUM_STATES), jnp.float32, -b1, b1)
    w2 = jax.random.uniform(k2, (NUM_ACTIONS, HIDDEN), jnp.float32, -b2, b2)
    return w1, w2


if __name__ == "__main__":
    key = jax.random.PRNGKey(0)
    kx, kp, kx2 = jax.random.split(key, 3)

    batch = 8
    x = jax.random.normal(kx, (batch, NUM_STATES), jnp.float32)
    w1, w2 = init_params(kp)

    # Training-mode forward (dropout on).
    probs = jax.block_until_ready(policy_forward(x, w1, w2, seed=0, training=True))
    assert probs.shape == (batch, NUM_ACTIONS)
    assert bool(jnp.all(jnp.isfinite(probs)))
    assert bool(jnp.allclose(jnp.sum(probs, axis=-1), 1.0, atol=1e-5))

    # Eval-mode forward matches the pure-JAX reference.
    probs_eval = jax.block_until_ready(policy_forward(x, w1, w2, training=False))
    ref = policy_reference(x, w1, w2)
    assert bool(jnp.allclose(probs_eval, ref, atol=2e-3))

    # Multi-tile grid path (batch > tile), eval mode vs reference.
    xb = jax.random.normal(kx2, (260, NUM_STATES), jnp.float32)
    probs_big = jax.block_until_ready(policy_forward(xb, w1, w2, training=False, tb=128))
    assert bool(jnp.allclose(probs_big, policy_reference(xb, w1, w2), atol=2e-3))

    print("KERNEL_OK")
</pallas_src>

<mosaic_0001>
module attributes {stable_mosaic.version = 11 : i64} {
  func.func @policy_kernel(%arg0: i32, %arg1: memref<1xi32, #tpu.memory_space<smem>>, %arg2: memref<4x128xbf16, #tpu.memory_space<vmem>>, %arg3: memref<128x4xbf16, #tpu.memory_space<vmem>>, %arg4: memref<2x128xbf16, #tpu.memory_space<vmem>>, %arg5: memref<2x128xf32, #tpu.memory_space<vmem>>) attributes {dimension_semantics = [#tpu.dimension_semantics<parallel>], iteration_bounds = array<i64: 1>, scalar_prefetch = 0 : i64, scratch_operands = 0 : i64, tpu.core_type = #tpu.core_type<tc>, window_params = [{transform_indices = @transform_0, window_bounds = array<i64: 1>}, {transform_indices = @transform_1, window_bounds = array<i64: 4, 128>}, {pipeline_mode = #tpu.pipeline_mode<synchronous>, transform_indices = @transform_2, window_bounds = array<i64: 128, 4>}, {pipeline_mode = #tpu.pipeline_mode<synchronous>, transform_indices = @transform_3, window_bounds = array<i64: 2, 128>}, {transform_indices = @transform_4, window_bounds = array<i64: 2, 128>}]} {
    %c0 = arith.constant 0 : index
    %c0_0 = arith.constant 0 : index
    %0 = vector.load %arg2[%c0, %c0_0] : memref<4x128xbf16, #tpu.memory_space<vmem>>, vector<4x128xbf16>
    %c0_1 = arith.constant 0 : index
    %c0_2 = arith.constant 0 : index
    %1 = vector.load %arg3[%c0_1, %c0_2] : memref<128x4xbf16, #tpu.memory_space<vmem>>, vector<128x4xbf16>
    %c0_3 = arith.constant 0 : index
    %c0_4 = arith.constant 0 : index
    %2 = vector.load %arg4[%c0_3, %c0_4] : memref<2x128xbf16, #tpu.memory_space<vmem>>, vector<2x128xbf16>
    %cst = arith.constant dense<0.000000e+00> : vector<128x128xf32>
    %3 = tpu.matmul %1, %0, %cst {dimension_numbers = #tpu.dot_dimension_numbers<[1], [0], [0], [1], [0, 0, 1, 1], [], []>} : vector<128x4xbf16>, vector<4x128xbf16>, vector<128x128xf32> -> vector<128x128xf32>
    %c0_5 = arith.constant 0 : index
    %4 = memref.load %arg1[%c0_5] : memref<1xi32, #tpu.memory_space<smem>>
    %5 = tpu.iota {dimensions = array<i32: 0>} : vector<128x128xi32>
    %6 = tpu.iota {dimensions = array<i32: 1>} : vector<128x128xi32>
    %c-1640531527_i32 = arith.constant -1640531527 : i32
    %7 = arith.muli %arg0, %c-1640531527_i32 : i32
    %8 = arith.addi %4, %7 : i32
    %c16_i32 = arith.constant 16 : i32
    %9 = arith.shrui %8, %c16_i32 : i32
    %10 = arith.xori %8, %9 : i32
    %c2146121005_i32 = arith.constant 2146121005 : i32
    %11 = arith.muli %10, %c2146121005_i32 : i32
    %c15_i32 = arith.constant 15 : i32
    %12 = arith.shrui %11, %c15_i32 : i32
    %13 = arith.xori %11, %12 : i32
    %c-2073254261_i32 = arith.constant -2073254261 : i32
    %14 = arith.muli %13, %c-2073254261_i32 : i32
    %c16_i32_6 = arith.constant 16 : i32
    %15 = arith.shrui %14, %c16_i32_6 : i32
    %16 = arith.xori %14, %15 : i32
    %c-2048144789_i32 = arith.constant -2048144789 : i32
    %17 = vector.broadcast %c-2048144789_i32 : i32 to vector<128x128xi32>
    %18 = arith.muli %5, %17 : vector<128x128xi32>
    %c-1028477387_i32 = arith.constant -1028477387 : i32
    %19 = vector.broadcast %c-1028477387_i32 : i32 to vector<128x128xi32>
    %20 = arith.muli %6, %19 : vector<128x128xi32>
    %21 = arith.xori %18, %20 : vector<128x128xi32>
    %22 = vector.broadcast %16 : i32 to vector<128x128xi32>
    %23 = arith.xori %21, %22 : vector<128x128xi32>
    %c16_i32_7 = arith.constant 16 : i32
    %24 = vector.broadcast %c16_i32_7 : i32 to vector<128x128xi32>
    %25 = arith.shrui %23, %24 : vector<128x128xi32>
    %26 = arith.xori %23, %25 : vector<128x128xi32>
    %c2146121005_i32_8 = arith.constant 2146121005 : i32
    %27 = vector.broadcast %c2146121005_i32_8 : i32 to vector<128x128xi32>
    %28 = arith.muli %26, %27 : vector<128x128xi32>
    %c15_i32_9 = arith.constant 15 : i32
    %29 = vector.broadcast %c15_i32_9 : i32 to vector<128x128xi32>
    %30 = arith.shrui %28, %29 : vector<128x128xi32>
    %31 = arith.xori %28, %30 : vector<128x128xi32>
    %c-2073254261_i32_10 = arith.constant -2073254261 : i32
    %32 = vector.broadcast %c-2073254261_i32_10 : i32 to vector<128x128xi32>
    %33 = arith.muli %31, %32 : vector<128x128xi32>
    %c16_i32_11 = arith.constant 16 : i32
    %34 = vector.broadcast %c16_i32_11 : i32 to vector<128x128xi32>
    %35 = arith.shrui %33, %34 : vector<128x128xi32>
    %36 = arith.xori %33, %35 : vector<128x128xi32>
    %37 = arith.addi %36, %5 : vector<128x128xi32>
    %38 = arith.addi %37, %6 : vector<128x128xi32>
    %c16_i32_12 = arith.constant 16 : i32
    %39 = vector.broadcast %c16_i32_12 : i32 to vector<128x128xi32>
    %40 = arith.shrui %38, %39 : vector<128x128xi32>
    %41 = arith.xori %38, %40 : vector<128x128xi32>
    %c2146121005_i32_13 = arith.constant 2146121005 : i32
    %42 = vector.broadcast %c2146121005_i32_13 : i32 to vector<128x128xi32>
    %43 = arith.muli %41, %42 : vector<128x128xi32>
    %c15_i32_14 = arith.constant 15 : i32
    %44 = vector.broadcast %c15_i32_14 : i32 to vector<128x128xi32>
    %45 = arith.shrui %43, %44 : vector<128x128xi32>
    %46 = arith.xori %43, %45 : vector<128x128xi32>
    %c-2073254261_i32_15 = arith.constant -2073254261 : i32
    %47 = vector.broadcast %c-2073254261_i32_15 : i32 to vector<128x128xi32>
    %48 = arith.muli %46, %47 : vector<128x128xi32>
    %c16_i32_16 = arith.constant 16 : i32
    %49 = vector.broadcast %c16_i32_16 : i32 to vector<128x128xi32>
    %50 = arith.shrui %48, %49 : vector<128x128xi32>
    %51 = arith.xori %48, %50 : vector<128x128xi32>
    %c1717986918_i32 = arith.constant 1717986918 : i32
    %52 = vector.broadcast %c1717986918_i32 : i32 to vector<128x128xi32>
    %53 = arith.cmpi ult, %51, %52 : vector<128x128xi32>
    %cst_17 = arith.constant 2.500000e+00 : f32
    %54 = vector.broadcast %cst_17 : f32 to vector<128x128xf32>
    %55 = arith.mulf %3, %54 : vector<128x128xf32>
    %cst_18 = arith.constant 0.000000e+00 : f32
    %56 = vector.broadcast %cst_18 : f32 to vector<128x128xf32>
    %57 = arith.select %53, %55, %56 : vector<128x128xi1>, vector<128x128xf32>
    %58 = math.tanh %57 : vector<128x128xf32>
    %59 = arith.truncf %58 : vector<128x128xf32> to vector<128x128xbf16>
    %cst_19 = arith.constant dense<0.000000e+00> : vector<2x128xf32>
    %60 = tpu.matmul %2, %59, %cst_19 {dimension_numbers = #tpu.dot_dimension_numbers<[1], [0], [0], [1], [0, 0, 1, 1], [], []>} : vector<2x128xbf16>, vector<128x128xbf16>, vector<2x128xf32> -> vector<2x128xf32>
    %61 = vector.extract_strided_slice %60 {offsets = [0, 0], sizes = [1, 128], strides = [1, 1]} : vector<2x128xf32> to vector<1x128xf32>
    %62 = vector.extract_strided_slice %60 {offsets = [1, 0], sizes = [1, 128], strides = [1, 1]} : vector<2x128xf32> to vector<1x128xf32>
    %63 = arith.subf %61, %62 : vector<1x128xf32>
    %cst_20 = arith.constant 0.000000e+00 : f32
    %64 = vector.broadcast %cst_20 : f32 to vector<1x128xf32>
    %65 = arith.subf %64, %63 : vector<1x128xf32>
    %66 = math.exp %65 : vector<1x128xf32>
    %cst_21 = arith.constant 1.000000e+00 : f32
    %67 = vector.broadcast %cst_21 : f32 to vector<1x128xf32>
    %68 = arith.addf %67, %66 : vector<1x128xf32>
    %cst_22 = arith.constant 1.000000e+00 : f32
    %69 = vector.broadcast %cst_22 : f32 to vector<1x128xf32>
    %70 = arith.divf %69, %68 : vector<1x128xf32>
    %cst_23 = arith.constant 1.000000e+00 : f32
    %71 = vector.broadcast %cst_23 : f32 to vector<1x128xf32>
    %72 = arith.subf %71, %70 : vector<1x128xf32>
    %c0_24 = arith.constant 0 : index
    %c0_25 = arith.constant 0 : index
    %73 = vector.load %arg5[%c0_24, %c0_25] : memref<2x128xf32, #tpu.memory_space<vmem>>, vector<1x128xf32>
    tpu.vector_store %arg5[%c0_24, %c0_25], %70 {strides = array<i32>} : memref<2x128xf32, #tpu.memory_space<vmem>>, vector<1x128xf32>,
    %c1 = arith.constant 1 : index
    %c0_26 = arith.constant 0 : index
    %74 = vector.load %arg5[%c1, %c0_26] : memref<2x128xf32, #tpu.memory_space<vmem>>, vector<1x128xf32>
    tpu.vector_store %arg5[%c1, %c0_26], %72 {strides = array<i32>} : memref<2x128xf32, #tpu.memory_space<vmem>>, vector<1x128xf32>,
    return
  }
  func.func @transform_0(%arg0: i32) -> i32 {
    %c0_i32 = arith.constant 0 : i32
    %c0_i32_0 = arith.constant 0 : i32
    return %c0_i32 : i32
  }
  func.func @transform_1(%arg0: i32) -> (i32, i32) {
    %c0_i32 = arith.constant 0 : i32
    %c0_i32_0 = arith.constant 0 : i32
    return %c0_i32, %arg0 : i32, i32
  }
  func.func @transform_2(%arg0: i32) -> (i32, i32) {
    %c0_i32 = arith.constant 0 : i32
    %c0_i32_0 = arith.constant 0 : i32
    %c0_i32_1 = arith.constant 0 : i32
    return %c0_i32, %c0_i32_0 : i32, i32
  }
  func.func @transform_3(%arg0: i32) -> (i32, i32) {
    %c0_i32 = arith.constant 0 : i32
    %c0_i32_0 = arith.constant 0 : i32
    %c0_i32_1 = arith.constant 0 : i32
    return %c0_i32, %c0_i32_0 : i32, i32
  }
  func.func @transform_4(%arg0: i32) -> (i32, i32) {
    %c0_i32 = arith.constant 0 : i32
    %c0_i32_0 = arith.constant 0 : i32
    return %c0_i32, %arg0 : i32, i32
  }
}

</mosaic_0001>

<bundles_post_ra>
// kernel: tpu_custom_call.1
= control target key start
LH: loop header
LB: loop body
LE: loop exit
PB: predicated region body
PF: predicated region fallthrough
CT: control target
= control target key end

     0   :  { %vm103_vm0 = vcmask 1041408   ;;  %vm78_vm1 = vcmask 31744   ;;  %s1123_s0 = inlined_call_operand.<no memory space> [shape: s32[1], index: 0, kind: input, shape index: {}]   ;;  %s1124_s1 = inlined_call_operand.vmem [shape: bf16[4,128], index: 1, kind: input, shape index: {}]   ;;  %s1125_s2 = inlined_call_operand.vmem [shape: bf16[128,4], index: 2, kind: input, shape index: {}]   ;;  %s1126_s3 = inlined_call_operand.vmem [shape: bf16[2,128], index: 3, kind: input, shape index: {}]   ;;  %s1127_s4 = inlined_call_operand.hbm [shape: f32[2,128], index: 4, kind: output, shape index: {}]  }
   0x1   :  { %v20_v0 = vld [vmem:[%s1124_s1] sm:$0x3]  ;;  %v788_v3 = vld [vmem:[%s1125_s2 + $0x8] sm:$0xff]   ;;  %v789_v4 = vld [vmem:[%s1125_s2 + $0x10] sm:$0xff]  }
   0x2   :  { %v787_v1 = vld [vmem:[%s1125_s2] sm:$0xff]   ;;  %783 = vmatprep.subr.msk.bf16.mxu0 %vm103_vm0, %v20_v0  ;;  %v105_v2 = vsel %vm103_vm0, %v20_v0, 0 }
   0x3   :  { %746 = vmatpush3.bf16.msra.mxu0 %v105_v2  ;;  %747 = vmatprep.mubr.msk.bf16.mxu0 %vm78_vm1, %v787_v1 }
   0x6   :  { %748 = vmatmul.mubr.msk.bf16.vlgmr.msra.gmra.mxu0 %vm78_vm1, %v788_v3 }
   0x7   :  { %751 = vmatprep.mubr.msk.bf16.mxu0 %vm78_vm1, %v789_v4 }
   0x8   :  { %10 = vsyncpa [#allocation4], 0  ;;  %v790_v5 = vld [vmem:[%s1125_s2 + $0x18] sm:$0xff]   ;;  %v791_v6 = vld [vmem:[%s1125_s2 + $0x20] sm:$0xff]   ;;  %s226_s8 = sshrl.u32 %s1123_s0, 16  ;;  %v853_v10 = vmov 0.0   ;;  %v205_v11 = vlaneseq }
   0x9   :  { %v792_v7 = vld [vmem:[%s1125_s2 + $0x28] sm:$0xff]   ;;  %v793_v8 = vld [vmem:[%s1125_s2 + $0x30] sm:$0xff]   ;;  %v794_v9 = vld [vmem:[%s1125_s2 + $0x38] sm:$0xff]   ;;  %763 = vmatprep.subr.bf16.mxu1 %v853_v10  ;;  %s227_s11 = sxor.u32 %s226_s8, %s1123_s0  ;;  %vm854_vm2 = vmmov 0   ;;  %s855_s18 = smov [#allocation3]  }
   0xa   :  { %s228_s12 = smul.u32 2146121005, %s227_s11  ;;  %v923_v12 = vshrl.u32 %v205_v11, 7  ;;  %v928_v14 = vand.u32 127, %v205_v11  ;;  %779 = vmatprep.mubr.msk.bf16.mxu1 %vm854_vm2, %v853_v10  ;;  %s703_s19 = sshll.u32 %s855_s18, 4  ;;  %s704_s19 = int_to_ptr.vmem [resolvable:$true] %s703_s19 }
   0xb   :  { %p836_p1 = scmp.lt.s32.totalorder %s704_s19, %s704_s19 }
   0xc   :  { %s229_s13 = sshrl.u32 %s228_s12, 15  ;;  %v926_v13 = vadd.s32 112, %v923_v12  ;;  %v931_v15 = vadd.s32 120, %v923_v12  ;;  %v935_v17 = vadd.s32 96, %v923_v12  ;;  %v938_v18 = vadd.s32 104, %v923_v12 }
   0xd   :  { %s230_s14 = sxor.u32 %s229_s13, %s228_s12  ;;  %v941_v19 = vmul.u32 3266489909, %v928_v14  ;;  %v944_v20 = vadd.s32 88, %v923_v12  ;;  %v949_v23 = vadd.s32 80, %v923_v12  ;;  %v954_v26 = vadd.s32 16, %v923_v12 }
   0xe   :  { %752 = vmatmul.mubr.msk.bf16.gmra.mxu0 %vm78_vm1, %v790_v5  ;;  %s231_s2 = smul.u32 2221713035, %s230_s14  ;;  %v248_v16 = vmul.u32 2246822507, %v926_v13  ;;  %v249_v21 = vmul.u32 2246822507, %v931_v15 }
   0xf   :  { %755 = vmatprep.mubr.msk.bf16.mxu0 %vm78_vm1, %v791_v6  ;;  %v246_v24 = vmul.u32 2246822507, %v935_v17  ;;  %v247_v25 = vmul.u32 2246822507, %v938_v18  ;;  %v960_v29 = vadd.s32 72, %v923_v12  ;;  %v964_v31 = vadd.s32 56, %v923_v12 }
  0x10   :  { %s232_s15 = sshrl.u32 %s231_s2, 16  ;;  %v265_v22 = vxor.u32 %v941_v19, %v248_v16  ;;  %v245_v28 = vmul.u32 2246822507, %v944_v20  ;;  %v266_v30 = vxor.u32 %v941_v19, %v249_v21  ;;  %v244_v33 = vmul.u32 2246822507, %v949_v23 }
  0x11   :  { %s233_s0 = sxor.u32 %s232_s15, %s231_s2  ;;  %v970_v34 = vadd.s32 64, %v923_v12  ;;  %v263_v35 = vxor.u32 %v941_v19, %v246_v24  ;;  %v264_v36 = vxor.u32 %v941_v19, %v247_v25  ;;  %v975_v37 = vadd.s32 48, %v923_v12 }
  0x12   :  { %v956_v27 = vstv %s233_s0  ;;  %v236_v38 = vmul.u32 2246822507, %v954_v26  ;;  %v262_v39 = vxor.u32 %v941_v19, %v245_v28  ;;  %v243_v40 = vmul.u32 2246822507, %v960_v29 }
  0x13   :  { %v282_v32 = vxor.u32 %v956_v27, %v265_v22  ;;  %v283_v41 = vxor.u32 %v956_v27, %v266_v30  ;;  %v241_v42 = vmul.u32 2246822507, %v964_v31  ;;  %v261_v44 = vxor.u32 %v941_v19, %v244_v33 }
  0x14   :  { %v242_v45 = vmul.u32 2246822507, %v970_v34  ;;  %v280_v46 = vxor.u32 %v956_v27, %v263_v35  ;;  %v281_v47 = vxor.u32 %v956_v27, %v264_v36  ;;  %v987_v48 = vadd.s32 24, %v923_v12 }
  0x15   :  { %v298_v43 = vshrl.u32 %v282_v32, 16  ;;  %v240_v49 = vmul.u32 2246822507, %v975_v37  ;;  %v991_v50 = vadd.s32 40, %v923_v12  ;;  %v253_v51 = vxor.u32 %v941_v19, %v236_v38 }
  0x16   :  { %756 = vmatmul.mubr.msk.bf16.gmra.mxu0 %vm78_vm1, %v792_v7  ;;  %v279_v52 = vxor.u32 %v956_v27, %v262_v39  ;;  %v260_v53 = vxor.u32 %v941_v19, %v243_v40  ;;  %v299_v54 = vshrl.u32 %v283_v41, 16  ;;  %v234_v55 = vmul.u32 2246822507, %v923_v12 }
  0x17   :  { %759 = vmatprep.mubr.msk.bf16.mxu0 %vm78_vm1, %v793_v8  ;;  %v998_v56 = vadd.s32 32, %v923_v12  ;;  %v258_v57 = vxor.u32 %v941_v19, %v241_v42  ;;  %v314_v58 = vxor.u32 %v298_v43, %v282_v32  ;;  %v278_v59 = vxor.u32 %v956_v27, %v261_v44 }
  0x18   :  { %v259_v60 = vxor.u32 %v941_v19, %v242_v45  ;;  %v296_v61 = vshrl.u32 %v280_v46, 16  ;;  %v297_v62 = vshrl.u32 %v281_v47, 16  ;;  %v237_v63 = vmul.u32 2246822507, %v987_v48 }
  0x19   :  { %v1005_v0 = vadd.s32 8, %v923_v12  ;;  %v257_v1 = vxor.u32 %v941_v19, %v240_v49  ;;  %v239_v2 = vmul.u32 2246822507, %v991_v50  ;;  %v270_v3 = vxor.u32 %v956_v27, %v253_v51 }
  0x1a   :  { %v295_v4 = vshrl.u32 %v279_v52, 16  ;;  %v277_v5 = vxor.u32 %v956_v27, %v260_v53  ;;  %v315_v6 = vxor.u32 %v299_v54, %v283_v41  ;;  %v251_v7 = vxor.u32 %v941_v19, %v234_v55 }
  0x1b   :  { %v238_v8 = vmul.u32 2246822507, %v998_v56  ;;  %v330_v11 = vmul.u32 2146121005, %v314_v58  ;;  %v294_v16 = vshrl.u32 %v278_v59, 16  ;;  %v276_v21 = vxor.u32 %v956_v27, %v259_v60 }
  0x1c   :  { %v312_v22 = vxor.u32 %v296_v61, %v280_v46  ;;  %v313_v24 = vxor.u32 %v297_v62, %v281_v47  ;;  %v254_v25 = vxor.u32 %v941_v19, %v237_v63  ;;  %v235_v28 = vmul.u32 2246822507, %v1005_v0 }
  0x1d   :  { %v274_v30 = vxor.u32 %v956_v27, %v257_v1  ;;  %v256_v32 = vxor.u32 %v941_v19, %v239_v2  ;;  %v286_v33 = vshrl.u32 %v270_v3, 16  ;;  %v311_v35 = vxor.u32 %v295_v4, %v279_v52 }
  0x1e   :  { %760 = vmatmul.mubr.msk.bf16.gmra.mxu0 %vm78_vm1, %v794_v9  ;;  %v275_v9 = vxor.u32 %v956_v27, %v258_v57  ;;  %v293_v36 = vshrl.u32 %v277_v5, 16  ;;  %v331_v38 = vmul.u32 2146121005, %v315_v6  ;;  %v268_v39 = vxor.u32 %v956_v27, %v251_v7 }
  0x1f   :  { %v255_v40 = vxor.u32 %v941_v19, %v238_v8  ;;  %v346_v42 = vshrl.u32 %v330_v11, 15  ;;  %v310_v43 = vxor.u32 %v294_v16, %v278_v59  ;;  %v292_v44 = vshrl.u32 %v276_v21, 16 }
  0x20   :  { %v291_v41 = vshrl.u32 %v275_v9, 16  ;;  %v328_v45 = vmul.u32 2146121005, %v312_v22  ;;  %v329_v46 = vmul.u32 2146121005, %v313_v24  ;;  %v271_v47 = vxor.u32 %v956_v27, %v254_v25 }
  0x21   :  { %v252_v49 = vxor.u32 %v941_v19, %v235_v28  ;;  %v290_v51 = vshrl.u32 %v274_v30, 16  ;;  %v273_v53 = vxor.u32 %v956_v27, %v256_v32  ;;  %v302_v52 = vxor.u32 %v286_v33, %v270_v3 }
  0x22   :  { %v327_v54 = vmul.u32 2146121005, %v311_v35  ;;  %v309_v55 = vxor.u32 %v293_v36, %v277_v5  ;;  %v347_v57 = vshrl.u32 %v331_v38, 15  ;;  %v284_v58 = vshrl.u32 %v268_v39, 16 }
  0x23   :  { %v272_v60 = vxor.u32 %v956_v27, %v255_v40  ;;  %v307_v61 = vxor.u32 %v291_v41, %v275_v9  ;;  %v362_v62 = vxor.u32 %v346_v42, %v330_v11  ;;  %v326_v59 = vmul.u32 2146121005, %v310_v43 }
  0x24   :  { %v308_v63 = vxor.u32 %v292_v44, %v276_v21  ;;  %v344_v1 = vshrl.u32 %v328_v45, 15  ;;  %v345_v2 = vshrl.u32 %v329_v46, 15  ;;  %v287_v4 = vshrl.u32 %v271_v47, 16 }
  0x25   :  { %v269_v6 = vxor.u32 %v956_v27, %v252_v49  ;;  %v306_v19 = vxor.u32 %v290_v51, %v274_v30  ;;  %v289_v7 = vshrl.u32 %v273_v53, 16  ;;  %v318_v8 = vmul.u32 2146121005, %v302_v52 }
  0x26   :  { %v343_v16 = vshrl.u32 %v327_v54, 15  ;;  %v325_v3 = vmul.u32 2146121005, %v309_v55  ;;  %v363_v22 = vxor.u32 %v347_v57, %v331_v38  ;;  %v300_v5 = vxor.u32 %v284_v58, %v268_v39 }
  0x27   :  { %v288_v24 = vshrl.u32 %v272_v60, 16  ;;  %v323_v25 = vmul.u32 2146121005, %v307_v61  ;;  %v378_v28 = vmul.u32 2221713035, %v362_v62  ;;  %v342_v32 = vshrl.u32 %v326_v59, 15 }
  0x28   :  { %v324_v9 = vmul.u32 2146121005, %v308_v63  ;;  %v360_v11 = vxor.u32 %v344_v1, %v328_v45  ;;  %v361_v33 = vxor.u32 %v345_v2, %v329_v46  ;;  %v303_v21 = vxor.u32 %v287_v4, %v271_v47 }
  0x29   :  { %v285_v35 = vshrl.u32 %v269_v6, 16  ;;  %v322_v36 = vmul.u32 2146121005, %v306_v19  ;;  %v305_v40 = vxor.u32 %v289_v7, %v273_v53  ;;  %v334_v41 = vshrl.u32 %v318_v8, 15 }
  0x2a   :  { %v359_v27 = vxor.u32 %v343_v16, %v327_v54  ;;  %v341_v30 = vshrl.u32 %v325_v3, 15  ;;  %v379_v42 = vmul.u32 2221713035, %v363_v22  ;;  %v316_v43 = vmul.u32 2146121005, %v300_v5 }
  0x2b   :  { %v304_v44 = vxor.u32 %v288_v24, %v272_v60  ;;  %v339_v49 = vshrl.u32 %v323_v25, 15  ;;  %v394_v38 = vshrl.u32 %v378_v28, 16  ;;  %v358_v39 = vxor.u32 %v342_v32, %v326_v59 }
  0x2c   :  { %v340_v51 = vshrl.u32 %v324_v9, 15  ;;  %v376_v52 = vmul.u32 2221713035, %v360_v11  ;;  %v377_v55 = vmul.u32 2221713035, %v361_v33  ;;  %v301_v58 = vxor.u32 %v285_v35, %v269_v6 }
  0x2d   :  { %v319_v57 = vmul.u32 2146121005, %v303_v21  ;;  %v338_v45 = vshrl.u32 %v322_v36, 15  ;;  %v321_v46 = vmul.u32 2146121005, %v305_v40  ;;  %v350_v47 = vxor.u32 %v334_v41, %v318_v8 }
  0x2e   :  { %v375_v61 = vmul.u32 2221713035, %v359_v27  ;;  %v357_v62 = vxor.u32 %v341_v30, %v325_v3  ;;  %v395_v53 = vshrl.u32 %v379_v42, 16  ;;  %v332_v63 = vshrl.u32 %v316_v43, 15 }
  0x2f   :  { %v320_v54 = vmul.u32 2146121005, %v304_v44  ;;  %v355_v1 = vxor.u32 %v339_v49, %v323_v25  ;;  %v410_v2 = vxor.u32 %v394_v38, %v378_v28  ;;  %v374_v4 = vmul.u32 2221713035, %v358_v39 }
  0x30   :  { %v356_v60 = vxor.u32 %v340_v51, %v324_v9  ;;  %v392_v19 = vshrl.u32 %v376_v52, 16  ;;  %v393_v7 = vshrl.u32 %v377_v55, 16  ;;  %v335_v59 = vshrl.u32 %v319_v57, 15 }
  0x31   :  { %v317_v16 = vmul.u32 2146121005, %v301_v58  ;;  %v354_v22 = vxor.u32 %v338_v45, %v322_v36  ;;  %v337_v5 = vshrl.u32 %v321_v46, 15  ;;  %v366_v24 = vmul.u32 2221713035, %v350_v47 }
  0x32   :  { %v391_v6 = vshrl.u32 %v375_v61, 16  ;;  %v373_v32 = vmul.u32 2221713035, %v357_v62  ;;  %v411_v11 = vxor.u32 %v395_v53, %v379_v42  ;;  %v348_v8 = vxor.u32 %v332_v63, %v316_v43 }
  0x33   :  { %v336_v33 = vshrl.u32 %v320_v54, 15  ;;  %v371_v3 = vmul.u32 2221713035, %v355_v1  ;;  %v426_v21 = vadd.s32 %v410_v2, %v926_v13  ;;  %v390_v35 = vshrl.u32 %v374_v4, 16 }
  0x34   :  { %v372_v25 = vmul.u32 2221713035, %v356_v60  ;;  %v408_v28 = vxor.u32 %v392_v19, %v376_v52  ;;  %v409_v40 = vxor.u32 %v393_v7, %v377_v55  ;;  %v351_v9 = vxor.u32 %v335_v59, %v319_v57 }
  0x35   :  { %v333_v41 = vshrl.u32 %v317_v16, 15  ;;  %v370_v27 = vmul.u32 2221713035, %v354_v22  ;;  %v353_v30 = vxor.u32 %v337_v5, %v321_v46  ;;  %v382_v44 = vshrl.u32 %v366_v24, 16 }
  0x36   :  { %v407_v36 = vxor.u32 %v391_v6, %v375_v61  ;;  %v389_v49 = vshrl.u32 %v373_v32, 16  ;;  %v427_v38 = vadd.s32 %v411_v11, %v931_v15  ;;  %v364_v39 = vmul.u32 2221713035, %v348_v8 }
  0x37   :  { %v352_v42 = vxor.u32 %v336_v33, %v320_v54  ;;  %v387_v43 = vshrl.u32 %v371_v3, 16  ;;  %v442_v51 = vadd.s32 %v426_v21, %v928_v14  ;;  %v406_v58 = vxor.u32 %v390_v35, %v374_v4 }
  0x38   :  { %v388_v13 = vshrl.u32 %v372_v25, 16  ;;  %v424_v45 = vadd.s32 %v408_v28, %v935_v17  ;;  %v425_v52 = vadd.s32 %v409_v40, %v938_v18  ;;  %v367_v55 = vmul.u32 2221713035, %v351_v9 }
  0x39   :  { %v349_v57 = vxor.u32 %v333_v41, %v317_v16  ;;  %v386_v47 = vshrl.u32 %v370_v27, 16  ;;  %v369_v46 = vmul.u32 2221713035, %v353_v30  ;;  %v398_v62 = vxor.u32 %v382_v44, %v366_v24 }
  0x3a   :  { %v423_v61 = vadd.s32 %v407_v36, %v944_v20  ;;  %v405_v53 = vxor.u32 %v389_v49, %v373_v32  ;;  %v443_v15 = vadd.s32 %v427_v38, %v928_v14  ;;  %v380_v63 = vshrl.u32 %v364_v39, 16 }
  0x3b   :  { %v368_v54 = vmul.u32 2221713035, %v352_v42  ;;  %v403_v1 = vxor.u32 %v387_v43, %v371_v3  ;;  %v458_v2 = vshrl.u32 %v442_v51, 16  ;;  %v422_v4 = vadd.s32 %v406_v58, %v949_v23 }
  0x3c   :  { %v404_v60 = vxor.u32 %v388_v13, %v372_v25  ;;  %v440_v17 = vadd.s32 %v424_v45, %v928_v14  ;;  %v441_v18 = vadd.s32 %v425_v52, %v928_v14  ;;  %v383_v19 = vshrl.u32 %v367_v55, 16 }
  0x3d   :  { %v365_v7 = vmul.u32 2221713035, %v349_v57  ;;  %v402_v59 = vxor.u32 %v386_v47, %v370_v27  ;;  %v385_v16 = vshrl.u32 %v369_v46, 16  ;;  %v414_v20 = vadd.s32 %v398_v62, %v954_v26 }
  0x3e   :  { %v439_v22 = vadd.s32 %v423_v61, %v928_v14  ;;  %v421_v5 = vadd.s32 %v405_v53, %v960_v29  ;;  %v459_v24 = vshrl.u32 %v443_v15, 16  ;;  %v396_v6 = vxor.u32 %v380_v63, %v364_v39 }
  0x3f   :  { %v384_v32 = vshrl.u32 %v368_v54, 16  ;;  %v419_v23 = vadd.s32 %v403_v1, %v964_v31  ;;  %v474_v11 = vxor.u32 %v458_v2, %v442_v51  ;;  %v438_v8 = vadd.s32 %v422_v4, %v928_v14 }
  0x40   :  { %v420_v33 = vadd.s32 %v404_v60, %v970_v34  ;;  %v456_v3 = vshrl.u32 %v440_v17, 16  ;;  %v457_v21 = vshrl.u32 %v441_v18, 16  ;;  %v399_v35 = vxor.u32 %v383_v19, %v367_v55 }
  0x41   :  { %v381_v25 = vshrl.u32 %v365_v7, 16  ;;  %v418_v26 = vadd.s32 %v402_v59, %v975_v37  ;;  %v401_v28 = vxor.u32 %v385_v16, %v369_v46  ;;  %v430_v29 = vadd.s32 %v414_v20, %v928_v14 }
  0x42   :  { %v455_v9 = vshrl.u32 %v439_v22, 16  ;;  %v437_v41 = vadd.s32 %v421_v5, %v928_v14  ;;  %v475_v31 = vxor.u32 %v459_v24, %v443_v15  ;;  %v412_v27 = vadd.s32 %v396_v6, %v923_v12 }
  0x43   :  { %v400_v30 = vxor.u32 %v384_v32, %v368_v54  ;;  %v435_v34 = vadd.s32 %v419_v23, %v928_v14  ;;  %v490_v44 = vmul.u32 2146121005, %v474_v11  ;;  %v454_v49 = vshrl.u32 %v438_v8, 16 }
  0x44   :  { %v436_v37 = vadd.s32 %v420_v33, %v928_v14  ;;  %v472_v38 = vxor.u32 %v456_v3, %v440_v17  ;;  %v473_v39 = vxor.u32 %v457_v21, %v441_v18  ;;  %v415_v42 = vadd.s32 %v399_v35, %v987_v48 }
  0x45   :  { %v397_v43 = vxor.u32 %v381_v25, %v365_v7  ;;  %v434_v51 = vadd.s32 %v418_v26, %v928_v14  ;;  %v417_v58 = vadd.s32 %v401_v28, %v991_v50  ;;  %v446_v13 = vshrl.u32 %v430_v29, 16 }
  0x46   :  { %v471_v45 = vxor.u32 %v455_v9, %v439_v22  ;;  %v453_v52 = vshrl.u32 %v437_v41, 16  ;;  %v491_v55 = vmul.u32 2146121005, %v475_v31  ;;  %v428_v57 = vadd.s32 %v412_v27, %v928_v14 }
  0x47   :  { %v416_v47 = vadd.s32 %v400_v30, %v998_v56  ;;  %v451_v46 = vshrl.u32 %v435_v34, 16  ;;  %v506_v62 = vshrl.u32 %v490_v44, 15  ;;  %v470_v48 = vxor.u32 %v454_v49, %v438_v8 }
  0x48   :  { %v452_v53 = vshrl.u32 %v436_v37, 16  ;;  %v488_v15 = vmul.u32 2146121005, %v472_v38  ;;  %v489_v63 = vmul.u32 2146121005, %v473_v39  ;;  %v431_v50 = vadd.s32 %v415_v42, %v928_v14 }
  0x49   :  { %v413_v54 = vadd.s32 %v397_v43, %v1005_v0  ;;  %v450_v1 = vshrl.u32 %v434_v51, 16  ;;  %v433_v2 = vadd.s32 %v417_v58, %v928_v14  ;;  %v462_v4 = vxor.u32 %v446_v13, %v430_v29 }
  0x4a   :  { %v487_v17 = vmul.u32 2146121005, %v471_v45  ;;  %v469_v56 = vxor.u32 %v453_v52, %v437_v41  ;;  %v507_v18 = vshrl.u32 %v491_v55, 15  ;;  %v444_v19 = vshrl.u32 %v428_v57, 16 }
  0x4b   :  { %v432_v7 = vadd.s32 %v416_v47, %v928_v14  ;;  %v467_v59 = vxor.u32 %v451_v46, %v435_v34  ;;  %v522_v16 = vxor.u32 %v506_v62, %v490_v44  ;;  %v486_v22 = vmul.u32 2146121005, %v470_v48 }
  0x4c   :  { %v468_v5 = vxor.u32 %v452_v53, %v436_v37  ;;  %v504_v24 = vshrl.u32 %v488_v15, 15  ;;  %v505_v0 = vshrl.u32 %v489_v63, 15  ;;  %v447_v6 = vshrl.u32 %v431_v50, 16 }
  0x4d   :  { %v429_v32 = vadd.s32 %v413_v54, %v928_v14  ;;  %v466_v23 = vxor.u32 %v450_v1, %v434_v51  ;;  %v449_v11 = vshrl.u32 %v433_v2, 16  ;;  %v478_v8 = vmul.u32 2146121005, %v462_v4 }
  0x4e   :  { %v503_v3 = vshrl.u32 %v487_v17, 15  ;;  %v485_v21 = vmul.u32 2146121005, %v469_v56  ;;  %v523_v35 = vxor.u32 %v507_v18, %v491_v55  ;;  %v448_v25 = vshrl.u32 %v432_v7, 16 }
  0x4f   :  { %v483_v26 = vmul.u32 2146121005, %v467_v59  ;;  %v538_v28 = vmul.u32 2221713035, %v522_v16  ;;  %v502_v9 = vshrl.u32 %v486_v22, 15  ;;  %v520_v31 = vxor.u32 %v504_v24, %v488_v15 }
  0x50   :  { %v484_v41 = vmul.u32 2146121005, %v468_v5  ;;  %v521_v27 = vxor.u32 %v505_v0, %v489_v63  ;;  %v463_v30 = vxor.u32 %v447_v6, %v431_v50  ;;  %v445_v34 = vshrl.u32 %v429_v32, 16 }
  0x51   :  { %v482_v14 = vmul.u32 2146121005, %v466_v23  ;;  %v465_v44 = vxor.u32 %v449_v11, %v433_v2  ;;  %v1074_v49 = vxor.u32 %v444_v19, %v428_v57  ;;  %v519_v38 = vxor.u32 %v503_v3, %v487_v17 }
  0x52   :  { %v501_v39 = vshrl.u32 %v485_v21, 15  ;;  %v539_v42 = vmul.u32 2221713035, %v523_v35  ;;  %v494_v43 = vshrl.u32 %v478_v8, 15  ;;  %v464_v51 = vxor.u32 %v448_v25, %v432_v7 }
  0x53   :  { %v499_v58 = vshrl.u32 %v483_v26, 15  ;;  %v554_v13 = vshrl.u32 %v538_v28, 16  ;;  %v518_v45 = vxor.u32 %v502_v9, %v486_v22  ;;  %v500_v55 = vshrl.u32 %v484_v41, 15 }
  0x54   :  { %v536_v47 = vmul.u32 2221713035, %v520_v31  ;;  %v537_v46 = vmul.u32 2221713035, %v521_v27  ;;  %v1080_v48 = vxor.u32 %v445_v34, %v429_v32  ;;  %v498_v57 = vshrl.u32 %v482_v14, 15 }
  0x55   :  { %v479_v62 = vmul.u32 2146121005, %v463_v30  ;;  %v481_v53 = vmul.u32 2146121005, %v465_v44  ;;  %v517_v54 = vxor.u32 %v501_v39, %v485_v21  ;;  %v555_v1 = vshrl.u32 %v539_v42, 16 }
  0x56   :  { %v476_v15 = vmul.u32 2146121005, %v1074_v49  ;;  %v535_v50 = vmul.u32 2221713035, %v519_v38  ;;  %v1083_v2 = vxor.u32 %v494_v43, %v478_v8  ;;  %v1085_v17 = vxor.u32 %v499_v58, %v483_v26 }
  0x57   :  { %v480_v4 = vmul.u32 2146121005, %v464_v51  ;;  %v570_v56 = vxor.u32 %v554_v13, %v538_v28  ;;  %v534_v18 = vmul.u32 2221713035, %v518_v45  ;;  %v516_v19 = vxor.u32 %v500_v55, %v484_v41 }
  0x58   :  { %v552_v59 = vshrl.u32 %v536_v47, 16  ;;  %v553_v16 = vshrl.u32 %v537_v46, 16  ;;  %v495_v22 = vshrl.u32 %v479_v62, 15  ;;  %v477_v5 = vmul.u32 2146121005, %v1080_v48 }
  0x59   :  { %v1088_v24 = vxor.u32 %v498_v57, %v482_v14  ;;  %v497_v0 = vshrl.u32 %v481_v53, 15  ;;  %v492_v6 = vshrl.u32 %v476_v15, 15  ;;  %v551_v32 = vshrl.u32 %v535_v50, 16 }
  0x5a   :  { %v533_v23 = vmul.u32 2221713035, %v517_v54  ;;  %v571_v8 = vxor.u32 %v555_v1, %v539_v42  ;;  %v496_v3 = vshrl.u32 %v480_v4, 15  ;;  %v531_v21 = vmul.u32 2221713035, %v1085_v17 }
  0x5b   :  { %vm586_vm3 = vcmp.lt.u32.totalorder %v570_v56, 1717986918  ;;  %v550_v25 = vshrl.u32 %v534_v18, 16  ;;  %v532_v26 = vmul.u32 2221713035, %v516_v19  ;;  %v568_v9 = vxor.u32 %v552_v59, %v536_v47 }
  0x5c   :  { %v569_v41 = vxor.u32 %v553_v16, %v537_v46  ;;  %v1093_v31 = vxor.u32 %v495_v22, %v479_v62  ;;  %v493_v27 = vshrl.u32 %v477_v5, 15  ;;  %v530_v30 = vmul.u32 2221713035, %v1088_v24 }
  0x5d   :  { %v513_v34 = vxor.u32 %v497_v0, %v481_v53  ;;  %v567_v14 = vxor.u32 %v551_v32, %v535_v50  ;;  %v549_v44 = vshrl.u32 %v533_v23, 16  ;;  %vm587_vm4 = vcmp.lt.u32.totalorder %v571_v8, 1717986918 }
  0x5e   :  { %v512_v42 = vxor.u32 %v496_v3, %v480_v4  ;;  %v547_v43 = vshrl.u32 %v531_v21, 16  ;;  %v566_v13 = vxor.u32 %v550_v25, %v534_v18  ;;  %v548_v45 = vshrl.u32 %v532_v26, 16 }
  0x5f   :  { %vm584_vm5 = vcmp.lt.u32.totalorder %v568_v9, 1717986918  ;;  %vm585_vm6 = vcmp.lt.u32.totalorder %v569_v41, 1717986918  ;;  %v529_v48 = vmul.u32 2221713035, %v513_v34  ;;  %v565_v57 = vxor.u32 %v549_v44, %v533_v23 }
  0x60   :  { %vm583_vm7 = vcmp.lt.u32.totalorder %v567_v14, 1717986918  ;;  %v546_v53 = vshrl.u32 %v530_v30, 16  ;;  %v528_v4 = vmul.u32 2221713035, %v512_v42  ;;  %v564_v17 = vxor.u32 %v548_v45, %v532_v26 }
  0x61   :  { %vm582_vm8 = vcmp.lt.u32.totalorder %v566_v13, 1717986918  ;;  %v527_v56 = vmul.u32 2221713035, %v1093_v31  ;;  %v509_v18 = vxor.u32 %v493_v27, %v477_v5  ;;  %v563_v59 = vxor.u32 %v547_v43, %v531_v21 }
  0x62   :  { %v545_v16 = vshrl.u32 %v529_v48, 16  ;;  %vm581_vm9 = vcmp.lt.u32.totalorder %v565_v57, 1717986918  ;;  %v526_v22 = vmul.u32 2221713035, %v1083_v2  ;;  %v562_v32 = vxor.u32 %v546_v53, %v530_v30 }
  0x63   :  { %v544_v23 = vshrl.u32 %v528_v4, 16  ;;  %vm580_vm10 = vcmp.lt.u32.totalorder %v564_v17, 1717986918  ;;  %v525_v8 = vmul.u32 2221713035, %v509_v18 }
  0x64   :  { %vm579_vm11 = vcmp.lt.u32.totalorder %v563_v59, 1717986918  ;;  %v561_v3 = vxor.u32 %v545_v16, %v529_v48  ;;  %v542_v21 = vshrl.u32 %v526_v22, 16  ;;  %vm578_vm12 = vcmp.lt.u32.totalorder %v562_v32, 1717986918 }
  0x66   :  { %vm577_vm13 = vcmp.lt.u32.totalorder %v561_v3, 1717986918  ;;  %v558_v9 = vxor.u32 %v542_v21, %v526_v22 }
  0x68   :  { %vm574_vm0 = vcmp.lt.u32.totalorder %v558_v9, 1717986918 }
  0xc6   :  { %v1043_v40 = vpop.f32.mrf.mxu0 }
  0xc8   :  { %v1049_v36 = vpop.f32.mrf.mxu0 }
  0xc9   :  { %v588_v45 = vmul.f32 2.5, %v1049_v36 }
  0xca   :  { %v1055_v12 = vpop.f32.mrf.mxu0 }
  0xcb   :  { %v591_v34 = vmul.f32 2.5, %v1055_v12 }
  0xcc   :  { %v1059_v61 = vpop.f32.mrf.mxu0 }
  0xce   :  { %v1064_v60 = vpop.f32.mrf.mxu0 }
  0xcf   :  { %v594_v2 = vmul.f32 2.5, %v1064_v60 }
  0xd0   :  { %v1067_v20 = vpop.f32.mrf.mxu0 }
  0xd1   :  { %v610_v41 = vsel %vm578_vm12, %v594_v2, 0.0  ;;  %v592_v31 = vmul.f32 2.5, %v1067_v20 }
  0xd2   :  { %v1070_v33 = vpop.f32.mrf.mxu0 }
  0xd3   :  { %v595_v5 = vmul.f32 2.5, %v1070_v33 }
  0xd4   :  { %v1072_v29 = vpop.f32.mrf.mxu0 }
  0xd6   :  { %v1076_v37 = vpop.f32.mrf.mxu0 }
  0xd7   :  { %v598_v50 = vmul.f32 2.5, %v1076_v37  ;;  %v508_v37 = vxor.u32 %v492_v6, %v476_v15  ;;  %v560_v6 = vxor.u32 %v544_v23, %v528_v4 }
  0xd8   :  { %v1078_v52 = vpop.f32.mrf.mxu0 }
  0xd9   :  { %v614_v24 = vsel %vm582_vm8, %v598_v50, 0.0  ;;  %v596_v0 = vmul.f32 2.5, %v1078_v52  ;;  %v524_v15 = vmul.u32 2221713035, %v508_v37  ;;  %v611_v52 = vsel %vm579_vm11, %v595_v5, 0.0 }
  0xda   :  { %v758_v63 = vpop.f32.mrf.mxu0  ;;  %vm576_vm14 = vcmp.lt.u32.totalorder %v560_v6, 1717986918 }
  0xdb   :  { %v599_v47 = vmul.f32 2.5, %v758_v63  ;;  %v612_v49 = vsel %vm580_vm10, %v596_v0, 0.0  ;;  %v540_v27 = vshrl.u32 %v524_v15, 16 }
  0xdc   :  { %v176_v7 = vpop.f32.mrf.mxu0 }
  0xdd   :  { %v615_v63 = vsel %vm583_vm7, %v599_v47, 0.0  ;;  %v597_v19 = vmul.f32 2.5, %v176_v7  ;;  %v556_v20 = vxor.u32 %v540_v27, %v524_v15 }
  0xde   :  { %v761_v11 = vpop.f32.mrf.mxu0 }
  0xdf   :  { %v602_v35 = vmul.f32 2.5, %v761_v11  ;;  %v543_v11 = vshrl.u32 %v527_v56, 16  ;;  %v613_v7 = vsel %vm581_vm9, %v597_v19, 0.0  ;;  %vm572_vm2 = vcmp.lt.u32.totalorder %v556_v20, 1717986918 }
  0xe0   :  { %v189_v28 = vpop.f32.mrf.mxu0  ;;  %v37_v19 = vld [vmem:[%s1126_s3] sm:$0x1]  ;;  %s831_s3 = scalar_lea.vmem %s704_s19, 32 }
  0xe1   :  { %v618_v38 = vsel %vm586_vm3, %v602_v35, 0.0  ;;  %v600_v51 = vmul.f32 2.5, %v189_v28  ;;  %v593_v35 = vmul.f32 2.5, %v1072_v29  ;;  %v559_v26 = vxor.u32 %v543_v11, %v527_v56  ;;  %p832_p0 = scmp.ne.s32.totalorder %s704_s19, %s831_s3  ;;  %p837_p2 = scmp.lt.s32.totalorder %s831_s3, %s831_s3 }
  0xe2   :  { %v762_v39 = vpop.f32.mrf.mxu0  ;;  %795 = vtanh.f32 %v618_v38  ;;  %v541_v28 = vshrl.u32 %v525_v8, 16  ;;  %v590_v38 = vmul.f32 2.5, %v1043_v40 }
  0xe3   :  { %v603_v58 = vmul.f32 2.5, %v762_v39  ;;  %v616_v54 = vsel %vm584_vm5, %v600_v51, 0.0  ;;  %v609_v14 = vsel %vm577_vm13, %v593_v35, 0.0  ;;  %vm575_vm15 = vcmp.lt.u32.totalorder %v559_v26, 1717986918  ;;  %p838_p3 = por %p837_p2, %p836_p1 }
  0xe4   :  { %v192_v55 = vpop.f32.mrf.mxu0  ;;  %v557_v29 = vxor.u32 %v541_v28, %v525_v8  ;;  %v608_v39 = vsel %vm576_vm14, %v592_v31, 0.0  ;;  %v607_v51 = vsel %vm575_vm15, %v591_v34, 0.0  ;;  %v606_v13 = vsel %vm574_vm0, %v590_v38, 0.0 }
  0xe5   :  { %v619_v46 = vsel %vm587_vm4, %v603_v58, 0.0  ;;  %v601_v62 = vmul.f32 2.5, %v192_v55  ;;  %v589_v58 = vmul.f32 2.5, %v1059_v61  ;;  %p839_p4 = pnand %p838_p3, %p832_p0 }
  0xe6   :  { %797 = vtanh.f32 %v619_v46  ;;  %vm573_vm1 = vcmp.lt.u32.totalorder %v557_v29, 1717986918 }
  0xe7   :  { %v617_v1 = vsel %vm585_vm6, %v601_v62, 0.0  ;;  %v605_v47 = vsel %vm573_vm1, %v589_v58, 0.0  ;;  %v604_v62 = vsel %vm572_vm2, %v588_v45, 0.0 }
  0xe8   :  { %799 = vtanh.f32 %v617_v1 }
  0xe9   :  { %801 = vtanh.f32 %v616_v54 }
  0xea   :  { %803 = vtanh.f32 %v615_v63 }
  0xeb   :  { %805 = vtanh.f32 %v614_v24 }
  0xec   :  { %807 = vtanh.f32 %v613_v7 }
  0xed   :  { %809 = vtanh.f32 %v612_v49 }
  0xee   :  { %811 = vtanh.f32 %v611_v52 }
  0xef   :  { %v796_v25 = vpop.eup %795  ;;  %813 = vtanh.f32 %v610_v41 }
  0xf0   :  { %815 = vtanh.f32 %v609_v14 }
  0xf1   :  { %817 = vtanh.f32 %v608_v39 }
  0xf2   :  { %819 = vtanh.f32 %v607_v51 }
  0xf3   :  { %v798_v33 = vpop.eup %797  ;;  %821 = vtanh.f32 %v606_v13 }
  0xf4   :  { %v643_v60 = vpack.c.bf16 %v798_v33, %v796_v25  ;;  %823 = vtanh.f32 %v605_v47 }
  0xf5   :  { %v800_v30 = vpop.eup %799  ;;  %825 = vtanh.f32 %v604_v62 }
  0xf6   :  { %764 = vmatpush3.bf16.msra.mxu1 %v643_v60  ;;  %v802_v44 = vpop.eup %801 }
  0xf7   :  { %765 = vmatprep.subr.bf16.mxu1 %v853_v10  ;;  %v642_v42 = vpack.c.bf16 %v800_v30, %v802_v44  ;;  %v804_v43 = vpop.eup %803 }
  0xf8   :  { %v806_v12 = vpop.eup %805 }
  0xf9   :  { %v641_v40 = vpack.c.bf16 %v804_v43, %v806_v12  ;;  %v808_v55 = vpop.eup %807 }
  0xfa   :  { %766 = vmatpush3.bf16.msra.mxu1 %v642_v42  ;;  %v810_v46 = vpop.eup %809 }
  0xfb   :  { %767 = vmatprep.subr.bf16.mxu1 %v853_v10  ;;  %v640_v61 = vpack.c.bf16 %v808_v55, %v810_v46  ;;  %v812_v48 = vpop.eup %811 }
  0xfc   :  { %v814_v57 = vpop.eup %813 }
  0xfd   :  { %v639_v36 = vpack.c.bf16 %v812_v48, %v814_v57  ;;  %v816_v53 = vpop.eup %815 }
  0xfe   :  { %768 = vmatpush3.bf16.msra.mxu1 %v641_v40  ;;  %v818_v50 = vpop.eup %817 }
  0xff   :  { %769 = vmatprep.subr.bf16.mxu1 %v853_v10  ;;  %v638_v54 = vpack.c.bf16 %v816_v53, %v818_v50  ;;  %v820_v1 = vpop.eup %819 }
 0x100   :  { %v822_v4 = vpop.eup %821 }
 0x101   :  { %v637_v17 = vpack.c.bf16 %v820_v1, %v822_v4  ;;  %v824_v56 = vpop.eup %823 }
 0x102   :  { %770 = vmatpush3.bf16.msra.mxu1 %v640_v61  ;;  %v826_v18 = vpop.eup %825 }
 0x103   :  { %771 = vmatprep.subr.bf16.mxu1 %v853_v10  ;;  %v636_v63 = vpack.c.bf16 %v824_v56, %v826_v18 }
 0x106   :  { %772 = vmatpush3.bf16.msra.mxu1 %v639_v36 }
 0x107   :  { %773 = vmatprep.subr.bf16.mxu1 %v853_v10 }
 0x10a   :  { %774 = vmatpush3.bf16.msra.mxu1 %v638_v54 }
 0x10b   :  { %775 = vmatprep.subr.bf16.mxu1 %v853_v10 }
 0x10e   :  { %776 = vmatpush3.bf16.msra.mxu1 %v637_v17 }
 0x10f   :  { %777 = vmatprep.subr.bf16.mxu1 %v853_v10 }
 0x112   :  { %778 = vmatpush3.bf16.msra.mxu1 %v636_v63 }
 0x115   :  { %780 = vmatmul.mubr.bf16.vlgmr.msra.gmra.mxu1 %v37_v19 }
 0x1d5   :  { %v678_v59 = vpop.f32.mrf.mxu1 }
 0x1d6   :  { %v685_v16 = vrot.slane %v678_v59, 1 }
 0x1d7   :  { %v781_v22 = vpop.f32.mrf.mxu1 }
 0x1d8   :  { %v687_v37 = vsub.f32 %v678_v59, %v685_v16 }
 0x1d9   :  { %v681_v24 = vpop.f32.mrf.mxu1 }
 0x1da   :  { %v688_v0 = vsub.f32 0.0, %v687_v37 }
 0x1db   :  { %v782_v32 = vpop.f32.mrf.mxu1 }
 0x1dc   :  { %v689_v23 = vmul.f32 1.442695, %v688_v0 }
 0x1de   :  { %827 = vpow2.f32 %v689_v23 }
 0x1eb   :  { %v828_v11 = vpop.eup %827 }
 0x1ec   :  { %v691_v5 = vadd.f32 1.0, %v828_v11 }
 0x1ee   :  { %829 = vrcp.f32 %v691_v5 }
 0x1fb   :  { %v830_v10 = vpop.eup %829 }
 0x1fc   :  { %695 = vst [vmem:[#allocation3] sm:$0x1] %v830_v10  ;;  %v694_v7 = vsub.f32 1.0, %v830_v10 }
 0x1fe   :  { %696 = vst [vmem:[#allocation3 + $0x1] sm:$0x1] %v694_v7 }
 0x1ff   :  { %842 = shalt.err (!%p839_p4)
}
 0x200   :  { %706 = dma.vmem_to_hbm [thread:$0]  %s704_s19, 32, %s1127_s4, [#allocation4]  }
 0x201   :  { %851 = dma.done.wait [#allocation4], 32  }
 0x202   :  { %852 = vsyncadd [#allocation4], 4294967264 }
 0x203   :  { %710 = vsyncpa [#allocation4], 1 }

</bundles_post_ra>
